<compile_context>
chip_gen: v7x
topology: tpu7x:2x2x1
jax: 0.10.0
libtpu: 0.0.40
codegen_flags: <defaults>
</compile_context>

<pallas_src>
import functools

import jax
import jax.numpy as jnp
from jax.experimental import pallas as pl
from jax.experimental.pallas import tpu as pltpu


def _round_up(x, m):
    return (x + m - 1) // m * m


def _capsule_kernel(x_ref, w_ref, o_ref, *, C, Np):
    # x_ref: (C, TB, d_in)  -- C capsules' activations for one batch tile
    # w_ref: (C, d_in, Np)  -- those capsules' flattened (padded) transforms
    # o_ref: (TB, C*Np)     -- lane-dense output slab for this (capsule, batch) tile
    for c in range(C):  # static unroll: each iteration is one MXU matmul
        y = jnp.dot(x_ref[c], w_ref[c], preferred_element_type=jnp.float32)
        o_ref[:, c * Np:(c + 1) * Np] = y.astype(o_ref.dtype)


def capsule_transform(x, weight):
    """x: (B, n_in, d_in), weight: (n_in, d_in, n_out, d_out)
    returns: (B, n_in, n_out, d_out)"""
    B, n_in, d_in = x.shape
    w_n_in, w_d_in, n_out, d_out = weight.shape
    assert n_in == w_n_in and d_in == w_d_in
    N = n_out * d_out
    itemsize = jnp.dtype(x.dtype).itemsize

    # ---- tiling choices --------------------------------------------------
    Np = _round_up(N, 128)            # lane-dense, unmasked output stores
    if B >= 128:
        TB = 128                      # large MXU M dimension
        B_pad = _round_up(B, TB)
    else:
        B_pad = _round_up(B, 8)       # unmasked sublanes
        TB = B_pad                    # single batch tile

    # Fuse C capsules per grid step; keep double-buffered blocks <= ~12 MiB
    # so we stay inside the scoped-VMEM default on every TPU generation.
    per_capsule_elems = TB * d_in + d_in * Np + TB * Np
    budget_elems = (6 * 1024 * 1024) // max(itemsize, 4)
    c_cap = max(1, budget_elems // max(per_capsule_elems, 1))
    C = 1
    for cand in range(min(n_in, c_cap), 0, -1):
        if n_in % cand == 0:
            C = cand
            break

    # ---- glue (cheap): capsule-major input, flattened/padded weight ------
    x_cm = jnp.transpose(x, (1, 0, 2))              # (n_in, B, d_in) — smallest tensor
    if B_pad != B:
        x_cm = jnp.pad(x_cm, ((0, 0), (0, B_pad - B), (0, 0)))
    w_flat = weight.reshape(n_in, d_in, N)          # (n_in, d_in, N)
    if Np != N:
        w_flat = jnp.pad(w_flat, ((0, 0), (0, 0), (0, Np - N)))

    grid = (n_in // C, B_pad // TB)   # B-tile innermost -> weight block stays resident

    kernel = functools.partial(_capsule_kernel, C=C, Np=Np)

    out2d = pl.pallas_call(
        kernel,
        out_shape=jax.ShapeDtypeStruct((B_pad, n_in * Np), x.dtype),
        grid_spec=pltpu.PrefetchScalarGridSpec(
            num_scalar_prefetch=0,
            grid=grid,
            in_specs=[
                pl.BlockSpec((C, TB, d_in), lambda i, b: (i, b, 0)),
                pl.BlockSpec((C, d_in, Np), lambda i, b: (i, 0, 0)),  # b-independent
            ],
            out_specs=pl.BlockSpec((TB, C * Np), lambda i, b: (b, i)),
        ),
        compiler_params=pltpu.CompilerParams(
            dimension_semantics=("parallel", "parallel")),
        cost_estimate=pl.CostEstimate(
            flops=2 * B * n_in * d_in * N,
            bytes_accessed=(B * n_in * d_in + n_in * d_in * N + B * n_in * N) * itemsize,
            transcendentals=0),
    )(x_cm, w_flat)

    # (B_pad, n_in*Np) -> (B, n_in, n_out, d_out); slices strip padding only.
    out = out2d.reshape(B_pad, n_in, Np)[:B, :, :N]
    return out.reshape(B, n_in, n_out, d_out)


def init_capsule_weight(key, in_capsules, in_features, out_capsules, out_features,
                        dtype=jnp.float32):
    """Deterministic xavier_uniform_ equivalent (PyTorch fan conventions for a
    4-D tensor: fan_in = size(1)*prod(dims[2:]), fan_out = size(0)*prod(dims[2:]))."""
    receptive = out_capsules * out_features
    fan_in = in_features * receptive
    fan_out = in_capsules * receptive
    bound = (6.0 / (fan_in + fan_out)) ** 0.5
    shape = (in_capsules, in_features, out_capsules, out_features)
    return jax.random.uniform(key, shape, dtype=dtype, minval=-bound, maxval=bound)


if __name__ == "__main__":
    B = 2
    in_capsules, in_features = 4, 16
    out_capsules, out_features = 8, 32

    key = jax.random.PRNGKey(0)
    k_x, k_w = jax.random.split(key)

    x = jax.random.normal(k_x, (B, in_capsules, in_features), dtype=jnp.float32)
    weight = init_capsule_weight(k_w, in_capsules, in_features,
                                 out_capsules, out_features)

    out = capsule_transform(x, weight)
    jax.block_until_ready(out)

    # Sanity check against a pure-JAX einsum reference.
    ref = jnp.einsum('bnd,ndoe->bnoe', x, weight)
    assert out.shape == (B, in_capsules, out_capsules, out_features)
    assert jnp.allclose(out, ref, atol=1e-5, rtol=1e-5)

    print("KERNEL_OK")
</pallas_src>

<mosaic_0001>
module attributes {stable_mosaic.version = 11 : i64} {
  func.func @_capsule_kernel(%arg0: i32, %arg1: i32, %arg2: memref<4x8x16xf32, #tpu.memory_space<vmem>>, %arg3: memref<4x16x256xf32, #tpu.memory_space<vmem>>, %arg4: memref<8x1024xf32, #tpu.memory_space<vmem>>) attributes {dimension_semantics = [#tpu.dimension_semantics<parallel>, #tpu.dimension_semantics<parallel>], iteration_bounds = array<i64: 1, 1>, scalar_prefetch = 0 : i64, scratch_operands = 0 : i64, tpu.core_type = #tpu.core_type<tc>, window_params = [{transform_indices = @transform_0, window_bounds = array<i64: 4, 8, 16>}, {transform_indices = @transform_1, window_bounds = array<i64: 4, 16, 256>}, {transform_indices = @transform_2, window_bounds = array<i64: 8, 1024>}]} {
    %c0 = arith.constant 0 : index
    %c0_0 = arith.constant 0 : index
    %c0_1 = arith.constant 0 : index
    %0 = vector.load %arg2[%c0, %c0_0, %c0_1] : memref<4x8x16xf32, #tpu.memory_space<vmem>>, vector<1x8x16xf32>
    %1 = vector.shape_cast %0 : vector<1x8x16xf32> to vector<8x16xf32>
    %c0_2 = arith.constant 0 : index
    %c0_3 = arith.constant 0 : index
    %c0_4 = arith.constant 0 : index
    %2 = vector.load %arg3[%c0_2, %c0_3, %c0_4] : memref<4x16x256xf32, #tpu.memory_space<vmem>>, vector<1x16x256xf32>
    %3 = vector.shape_cast %2 : vector<1x16x256xf32> to vector<16x256xf32>
    %cst = arith.constant dense<0.000000e+00> : vector<8x256xf32>
    %4 = tpu.matmul %1, %3, %cst {dimension_numbers = #tpu.dot_dimension_numbers<[1], [0], [0], [1], [0, 0, 1, 1], [], []>} : vector<8x16xf32>, vector<16x256xf32>, vector<8x256xf32> -> vector<8x256xf32>
    %c0_5 = arith.constant 0 : index
    %c0_6 = arith.constant 0 : index
    %5 = vector.load %arg4[%c0_5, %c0_6] : memref<8x1024xf32, #tpu.memory_space<vmem>>, vector<8x256xf32>
    tpu.vector_store %arg4[%c0_5, %c0_6], %4 {strides = array<i32>} : memref<8x1024xf32, #tpu.memory_space<vmem>>, vector<8x256xf32>,
    %c1 = arith.constant 1 : index
    %c0_7 = arith.constant 0 : index
    %c0_8 = arith.constant 0 : index
    %6 = vector.load %arg2[%c1, %c0_7, %c0_8] : memref<4x8x16xf32, #tpu.memory_space<vmem>>, vector<1x8x16xf32>
    %7 = vector.shape_cast %6 : vector<1x8x16xf32> to vector<8x16xf32>
    %c1_9 = arith.constant 1 : index
    %c0_10 = arith.constant 0 : index
    %c0_11 = arith.constant 0 : index
    %8 = vector.load %arg3[%c1_9, %c0_10, %c0_11] : memref<4x16x256xf32, #tpu.memory_space<vmem>>, vector<1x16x256xf32>
    %9 = vector.shape_cast %8 : vector<1x16x256xf32> to vector<16x256xf32>
    %cst_12 = arith.constant dense<0.000000e+00> : vector<8x256xf32>
    %10 = tpu.matmul %7, %9, %cst_12 {dimension_numbers = #tpu.dot_dimension_numbers<[1], [0], [0], [1], [0, 0, 1, 1], [], []>} : vector<8x16xf32>, vector<16x256xf32>, vector<8x256xf32> -> vector<8x256xf32>
    %c0_13 = arith.constant 0 : index
    %c256 = arith.constant 256 : index
    %11 = vector.load %arg4[%c0_13, %c256] : memref<8x1024xf32, #tpu.memory_space<vmem>>, vector<8x256xf32>
    tpu.vector_store %arg4[%c0_13, %c256], %10 {strides = array<i32>} : memref<8x1024xf32, #tpu.memory_space<vmem>>, vector<8x256xf32>,
    %c2 = arith.constant 2 : index
    %c0_14 = arith.constant 0 : index
    %c0_15 = arith.constant 0 : index
    %12 = vector.load %arg2[%c2, %c0_14, %c0_15] : memref<4x8x16xf32, #tpu.memory_space<vmem>>, vector<1x8x16xf32>
    %13 = vector.shape_cast %12 : vector<1x8x16xf32> to vector<8x16xf32>
    %c2_16 = arith.constant 2 : index
    %c0_17 = arith.constant 0 : index
    %c0_18 = arith.constant 0 : index
    %14 = vector.load %arg3[%c2_16, %c0_17, %c0_18] : memref<4x16x256xf32, #tpu.memory_space<vmem>>, vector<1x16x256xf32>
    %15 = vector.shape_cast %14 : vector<1x16x256xf32> to vector<16x256xf32>
    %cst_19 = arith.constant dense<0.000000e+00> : vector<8x256xf32>
    %16 = tpu.matmul %13, %15, %cst_19 {dimension_numbers = #tpu.dot_dimension_numbers<[1], [0], [0], [1], [0, 0, 1, 1], [], []>} : vector<8x16xf32>, vector<16x256xf32>, vector<8x256xf32> -> vector<8x256xf32>
    %c0_20 = arith.constant 0 : index
    %c512 = arith.constant 512 : index
    %17 = vector.load %arg4[%c0_20, %c512] : memref<8x1024xf32, #tpu.memory_space<vmem>>, vector<8x256xf32>
    tpu.vector_store %arg4[%c0_20, %c512], %16 {strides = array<i32>} : memref<8x1024xf32, #tpu.memory_space<vmem>>, vector<8x256xf32>,
    %c3 = arith.constant 3 : index
    %c0_21 = arith.constant 0 : index
    %c0_22 = arith.constant 0 : index
    %18 = vector.load %arg2[%c3, %c0_21, %c0_22] : memref<4x8x16xf32, #tpu.memory_space<vmem>>, vector<1x8x16xf32>
    %19 = vector.shape_cast %18 : vector<1x8x16xf32> to vector<8x16xf32>
    %c3_23 = arith.constant 3 : index
    %c0_24 = arith.constant 0 : index
    %c0_25 = arith.constant 0 : index
    %20 = vector.load %arg3[%c3_23, %c0_24, %c0_25] : memref<4x16x256xf32, #tpu.memory_space<vmem>>, vector<1x16x256xf32>
    %21 = vector.shape_cast %20 : vector<1x16x256xf32> to vector<16x256xf32>
    %cst_26 = arith.constant dense<0.000000e+00> : vector<8x256xf32>
    %22 = tpu.matmul %19, %21, %cst_26 {dimension_numbers = #tpu.dot_dimension_numbers<[1], [0], [0], [1], [0, 0, 1, 1], [], []>} : vector<8x16xf32>, vector<16x256xf32>, vector<8x256xf32> -> vector<8x256xf32>
    %c0_27 = arith.constant 0 : index
    %c768 = arith.constant 768 : index
    %23 = vector.load %arg4[%c0_27, %c768] : memref<8x1024xf32, #tpu.memory_space<vmem>>, vector<8x256xf32>
    tpu.vector_store %arg4[%c0_27, %c768], %22 {strides = array<i32>} : memref<8x1024xf32, #tpu.memory_space<vmem>>, vector<8x256xf32>,
    return
  }
  func.func @transform_0(%arg0: i32, %arg1: i32) -> (i32, i32, i32) {
    %c0_i32 = arith.constant 0 : i32
    %c0_i32_0 = arith.constant 0 : i32
    return %arg0, %arg1, %c0_i32 : i32, i32, i32
  }
  func.func @transform_1(%arg0: i32, %arg1: i32) -> (i32, i32, i32) {
    %c0_i32 = arith.constant 0 : i32
    %c0_i32_0 = arith.constant 0 : i32
    %c0_i32_1 = arith.constant 0 : i32
    return %arg0, %c0_i32, %c0_i32_0 : i32, i32, i32
  }
  func.func @transform_2(%arg0: i32, %arg1: i32) -> (i32, i32) {
    %c0_i32 = arith.constant 0 : i32
    return %arg1, %arg0 : i32, i32
  }
}

</mosaic_0001>

<bundles_post_ra>
// kernel: tpu_custom_call.1
= control target key start
LH: loop header
LB: loop body
LE: loop exit
PB: predicated region body
PF: predicated region fallthrough
CT: control target
= control target key end

     0   :  { %7 = vsyncpa [#allocation3], 0  ;;  %s550_s0 = inlined_call_operand.hbm [shape: f32[4,8,16], index: 0, kind: input, shape index: {}]   ;;  %s551_s1 = inlined_call_operand.hbm [shape: f32[4,16,256], index: 1, kind: input, shape index: {}]   ;;  %s552_s2 = inlined_call_operand.hbm [shape: f32[8,1024], index: 2, kind: output, shape index: {}]  }
   0x1   :  { %8 = vsyncpa [#allocation6], 0 }
   0x2   :  { %9 = vsyncpa [#allocation4], 0  ;;  %s487_s9 = smov [#allocation2]   ;;  %s415_s13 = scalar_lea.hbm %s550_s0, 512 }
   0x3   :  { %s15_s10 = sshll.u32 %s487_s9, 4  ;;  %p416_p0 = scmp.ne.s32.totalorder %s550_s0, %s415_s13  ;;  %s16_s10 = int_to_ptr.vmem [resolvable:$true] %s15_s10 }
   0x4   :  { %p419_p1 = scmp.lt.u32.totalorder %s415_s13, %s550_s0 }
   0x6   :  { %p421_p2 = pnand %p419_p1, %p416_p0 }
   0x8   :  { %424 = shalt.err (!%p421_p2)
}
   0x9   :  { %s425_s18 = scalar_lea.vmem %s16_s10, 512  ;;  %p430_p4 = scmp.lt.s32.totalorder %s16_s10, %s16_s10 }
   0xa   :  { %p426_p3 = scmp.ne.s32.totalorder %s16_s10, %s425_s18  ;;  %p431_p5 = scmp.lt.s32.totalorder %s425_s18, %s425_s18 }
   0xc   :  { %p432_p6 = por %p431_p5, %p430_p4 }
   0xe   :  { %p433_p7 = pnand %p432_p6, %p426_p3 }
  0x10   :  { %436 = shalt.err (!%p433_p7)
}
  0x11   :  { %s488_s19 = smov 128   ;;  %s489_s20 = smov 8  }
  0x12   :  { %21 = dma.hbm_to_vmem [thread:$0]  %s550_s0, 512, %s16_s10, [#allocation3], %s488_s19, %s488_s19, %s489_s20  }
  0x13   :  { %s490_s23 = smov [#allocation5]   ;;  %s437_s27 = scalar_lea.hbm %s551_s1, 2048 }
  0x14   :  { %s27_s24 = sshll.u32 %s490_s23, 4  ;;  %p438_p8 = scmp.ne.s32.totalorder %s551_s1, %s437_s27  ;;  %s28_s24 = int_to_ptr.vmem [resolvable:$true] %s27_s24 }
  0x15   :  { %p441_p9 = scmp.lt.u32.totalorder %s437_s27, %s551_s1 }
  0x17   :  { %p443_p10 = pnand %p441_p9, %p438_p8 }
  0x19   :  { %446 = shalt.err (!%p443_p10)
}
  0x1a   :  { %s447_s4 = scalar_lea.vmem %s28_s24, 2048  ;;  %p452_p12 = scmp.lt.s32.totalorder %s28_s24, %s28_s24 }
  0x1b   :  { %p448_p11 = scmp.ne.s32.totalorder %s28_s24, %s447_s4  ;;  %p453_p13 = scmp.lt.s32.totalorder %s447_s4, %s447_s4 }
  0x1d   :  { %p454_p0 = por %p453_p13, %p452_p12 }
  0x1f   :  { %p455_p1 = pnand %p454_p0, %p448_p11 }
  0x21   :  { %458 = shalt.err (!%p455_p1)
}
  0x22   :  { %s491_s0 = smov 256   ;;  %s492_s5 = smov 16  }
  0x23   :  { %33 = dma.hbm_to_vmem [thread:$0]  %s551_s1, 2048, %s28_s24, [#allocation6], %s491_s0, %s491_s0, %s492_s5  }
  0x24   :  { %481 = dma.done.wait [#allocation3], 512  }
  0x25   :  { %482 = vsyncadd [#allocation3], 4294966784 }
  0x26   :  { %483 = dma.done.wait [#allocation6], 2048  }
  0x27   :  { %484 = vsyncadd [#allocation6], 4294965248  ;;  %v493_v0 = vmov 0.0   ;;  %v42_v1 = vld [vmem:[#allocation5 + $0x8] sm:$0xff]  ;;  %v44_v2 = vld [vmem:[#allocation5 + $0x18] sm:$0xff]  ;;  %vm45_vm0 = vcmask 130048  }
  0x28   :  { %113 = vmatprep.mubr.f32.mxu0 %v493_v0  ;;  %196 = vmatprep.mubr.f32.mxu1 %v493_v0  ;;  %v126_v3 = vld [vmem:[#allocation5 + $0x28] sm:$0xff]  ;;  %v391_v4 = vpack.c.bf16 %v44_v2, %v42_v1  ;;  %v128_v5 = vld [vmem:[#allocation5 + $0x38] sm:$0xff]  ;;  %v41_v6 = vld [vmem:[#allocation5] sm:$0xff]  ;;  %s494_s1 = smov [#allocation7]  }
  0x29   :  { %v43_v7 = vld [vmem:[#allocation5 + $0x10] sm:$0xff]  ;;  %v395_v8 = vpack.c.bf16 %v128_v5, %v126_v3  ;;  %v125_v10 = vld [vmem:[#allocation5 + $0x20] sm:$0xff]  ;;  %v123_v14 = vld [vmem:[#allocation2 + $0x8] sm:$0xff]  ;;  %s377_s8 = sshll.u32 %s494_s1, 4  ;;  %s378_s8 = int_to_ptr.vmem [resolvable:$true] %s377_s8 }
  0x2a   :  { %v393_v9 = vpack.c.bf16 %v43_v7, %v41_v6  ;;  %v127_v11 = vld [vmem:[#allocation5 + $0x30] sm:$0xff]  ;;  %v40_v12 = vld [vmem:[#allocation2] sm:$0xff]  ;;  %392 = vmatprep.subr.bf16.mxu0 %v391_v4  ;;  %v209_v15 = vld [vmem:[#allocation5 + $0x48] sm:$0xff]  ;;  %s459_s9 = scalar_lea.vmem %s378_s8, 1024  ;;  %p464_p3 = scmp.lt.s32.totalorder %s378_s8, %s378_s8 }
  0x2b   :  { %v397_v13 = vpack.c.bf16 %v127_v11, %v125_v10  ;;  %v211_v16 = vld [vmem:[#allocation5 + $0x58] sm:$0xff]  ;;  %396 = vmatprep.subr.bf16.mxu1 %v395_v8  ;;  %v292_v18 = vld [vmem:[#allocation5 + $0x68] sm:$0xff]  ;;  %v208_v20 = vld [vmem:[#allocation5 + $0x40] sm:$0xff]  ;;  %p460_p2 = scmp.ne.s32.totalorder %s378_s8, %s459_s9  ;;  %p465_p4 = scmp.lt.s32.totalorder %s459_s9, %s459_s9 }
  0x2c   :  { %394 = vmatpush1.bf16.msra.mxu0 %v393_v9  ;;  %v399_v17 = vpack.c.bf16 %v211_v16, %v209_v15  ;;  %v294_v19 = vld [vmem:[#allocation5 + $0x78] sm:$0xff]  ;;  %v210_v22 = vld [vmem:[#allocation5 + $0x50] sm:$0xff]  ;;  %v291_v23 = vld [vmem:[#allocation5 + $0x60] sm:$0xff] }
  0x2d   :  { %398 = vmatpush1.bf16.msra.mxu1 %v397_v13  ;;  %v403_v21 = vpack.c.bf16 %v294_v19, %v292_v18  ;;  %v293_v24 = vld [vmem:[#allocation5 + $0x70] sm:$0xff]  ;;  %v401_v25 = vpack.c.bf16 %v210_v22, %v208_v20  ;;  %v289_v28 = vld [vmem:[#allocation2 + $0x18] sm:$0xff]  ;;  %p466_p5 = por %p465_p4, %p464_p3 }
  0x2e   :  { %400 = vmatprep.subr.bf16.mxu0 %v399_v17  ;;  %v405_v26 = vpack.c.bf16 %v293_v24, %v291_v23  ;;  %v206_v27 = vld [vmem:[#allocation2 + $0x10] sm:$0xff] }
  0x2f   :  { %387 = vmatmul.mubr.msk.f32.vlgmr.msra.gmra.mrb[0].mxu0 %vm45_vm0, %v40_v12  ;;  %404 = vmatprep.subr.bf16.mxu1 %v403_v21  ;;  %p467_p6 = pnand %p466_p5, %p460_p2 }
  0x30   :  { %388 = vmatmul.mubr.msk.f32.vlgmr.msra.gmra.mrb[0].mxu1 %vm45_vm0, %v123_v14  ;;  %402 = vmatpush1.bf16.msra.mxu0 %v401_v25 }
  0x31   :  { %406 = vmatpush1.bf16.msra.mxu1 %v405_v26  ;;  %279 = vmatprep.mubr.f32.mxu0 %v493_v0 }
  0x32   :  { %362 = vmatprep.mubr.f32.mxu1 %v493_v0 }
  0x33   :  { %389 = vmatmul.mubr.msk.f32.vlgmr.msra.gmra.mrb[2].mxu0 %vm45_vm0, %v206_v27 }
  0x34   :  { %390 = vmatmul.mubr.msk.f32.vlgmr.msra.gmra.mrb[2].mxu1 %vm45_vm0, %v289_v28 }
 0x102   :  { %v115_v29 = vpop.f32.mrb[0].mxu0 }
 0x103   :  { %120 = vst [vmem:[#allocation7] sm:$0xff] %v115_v29  ;;  %v198_v30 = vpop.f32.mrb[0].mxu1  ;;  %v117_v31 = vpop.f32.mrb[1].mxu0 }
 0x104   :  { %203 = vst [vmem:[#allocation7 + $0x10] sm:$0xff] %v198_v30  ;;  %121 = vst [vmem:[#allocation7 + $0x8] sm:$0xff] %v117_v31  ;;  %v200_v32 = vpop.f32.mrb[1].mxu1 }
 0x105   :  { %204 = vst [vmem:[#allocation7 + $0x18] sm:$0xff] %v200_v32 }
 0x106   :  { %v281_v33 = vpop.f32.mrb[2].mxu0 }
 0x107   :  { %286 = vst [vmem:[#allocation7 + $0x20] sm:$0xff] %v281_v33  ;;  %v364_v34 = vpop.f32.mrb[2].mxu1  ;;  %v283_v35 = vpop.f32.mrb[3].mxu0 }
 0x108   :  { %369 = vst [vmem:[#allocation7 + $0x30] sm:$0xff] %v364_v34  ;;  %287 = vst [vmem:[#allocation7 + $0x28] sm:$0xff] %v283_v35  ;;  %v366_v36 = vpop.f32.mrb[3].mxu1 }
 0x109   :  { %370 = vst [vmem:[#allocation7 + $0x38] sm:$0xff] %v366_v36 }
 0x10a   :  { %470 = shalt.err (!%p467_p6)
}
 0x10b   :  { %s471_s12 = scalar_lea.hbm %s552_s2, 1024 }
 0x10c   :  { %p472_p7 = scmp.ne.s32.totalorder %s552_s2, %s471_s12  ;;  %p475_p8 = scmp.lt.u32.totalorder %s471_s12, %s552_s2 }
 0x10e   :  { %p477_p9 = pnand %p475_p8, %p472_p7 }
 0x110   :  { %480 = shalt.err (!%p477_p9)
}
 0x111   :  { %380 = dma.vmem_to_hbm [thread:$0]  %s378_s8, 1024, %s552_s2, [#allocation4]  }
 0x112   :  { %485 = dma.done.wait [#allocation4], 1024  }
 0x113   :  { %486 = vsyncadd [#allocation4], 4294966272 }
 0x114   :  { %384 = vsyncpa [#allocation3], 1 }
 0x115   :  { %385 = vsyncpa [#allocation6], 1 }
 0x116   :  { %386 = vsyncpa [#allocation4], 1 }

</bundles_post_ra>
